<compile_context>
chip_gen: v7x
topology: tpu7x:2x2x1
jax: 0.10.0
libtpu: 0.0.40
codegen_flags: <defaults>
</compile_context>

<pallas_src>
import functools

import jax
import jax.numpy as jnp
from jax.experimental import pallas as pl
from jax.experimental.pallas import tpu as pltpu


def _round_up(x, m):
    return (x + m - 1) // m * m


# ---------------------------------------------------------------------------
# Kernel: fused (embedding-folded) MLP, feature-major layout
# ---------------------------------------------------------------------------
def fused_mlp_kernel(xn_ref, xc_ref, w1t_ref, b1_ref, w2t_ref, b2_ref, o_ref,
                     *, col_offsets, n_mh):
    # xn : [D_num, TB] f32         xc : [C, TB] i32
    # w1t: [Hp, F_pad] f32  (numeric rows + folded embedding rows, transposed)
    # b1 : [Hp, 1]                 w2t: [D_out, Hp]     b2: [D_out, 1]
    # o  : [D_out, TB]  (batch on lanes -> lane-dense stores)
    xn = xn_ref[...]
    xc = xc_ref[...]
    tb = xn.shape[1]

    # Multi-hot^T of offset-adjusted categorical indices:
    # row (off_c + k) of mh is 1 where x_cat[:, c] == k.  Column ranges are
    # disjoint, so a single OR-reduction + one cast is exact.
    sub = jax.lax.broadcasted_iota(jnp.int32, (n_mh, tb), 0)
    hit = None
    for c, off in enumerate(col_offsets):          # static unroll over columns
        cmp = sub == (xc[c:c + 1, :] + off)        # sublane-stride-0 broadcast
        hit = cmp if hit is None else (hit | cmp)
    mh = hit.astype(jnp.float32)                   # [n_mh, TB]

    # One fused matmul: numeric features occupy the first D_num rows of the
    # feature matrix, folded one-hot rows follow (exact by linearity).
    feat = jnp.concatenate([xn, mh], axis=0)       # [F_pad, TB]
    h = jnp.dot(w1t_ref[...], feat, preferred_element_type=jnp.float32)
    h = jnp.maximum(h + b1_ref[...], 0.0)          # bias + ReLU     [Hp, TB]
    y = jnp.dot(w2t_ref[...], h, preferred_element_type=jnp.float32) + b2_ref[...]
    o_ref[...] = jax.nn.sigmoid(y)                 # Sigmoid       [D_out, TB]


# ---------------------------------------------------------------------------
# Wrapper: lane-tiled (batch-on-lanes) pallas_call
# ---------------------------------------------------------------------------
def _choose_tile_b(b, cap):
    if b <= 128:
        return b                                   # single tile, block == full dim
    # Lane-aligned tile; aim for >= 2 tiles so v7x's two TensorCores both work.
    return min(cap, _round_up((b + 1) // 2, 128))


def nn1_forward(x_num, x_cat, kparams, *, tile_b_cap=8192):
    # TODO(synk): the folded-embedding (multi-hot @ table) path assumes
    # sum(n_unique) is O(100); for large vocabularies switch to scalar-prefetch
    # of x_cat with direct row gathers/DMA of the folded table instead.
    b = x_num.shape[0]
    w1t = kparams["w1t"]
    b1t = kparams["b1t"]
    w2t = kparams["w2t"]
    b2t = kparams["b2t"]
    d_out = w2t.shape[0]

    # Feature-major inputs: tiny wrapper transposes (~36 B/row total); a
    # producer that already emits [features, batch] can skip these entirely.
    xn_t = x_num.T.astype(jnp.float32)             # [D_num, B]
    xc_t = x_cat.T.astype(jnp.int32)               # [C, B]
    d_num = xn_t.shape[0]
    n_cols = xc_t.shape[0]

    tile_b = _choose_tile_b(b, tile_b_cap)
    grid = pl.cdiv(b, tile_b)                      # ragged last tile handled by Pallas

    kernel = functools.partial(fused_mlp_kernel,
                               col_offsets=kparams["col_offsets"],
                               n_mh=kparams["n_mh"])

    out_t = pl.pallas_call(
        kernel,
        out_shape=jax.ShapeDtypeStruct((d_out, b), jnp.float32),
        grid_spec=pltpu.PrefetchScalarGridSpec(
            num_scalar_prefetch=0,
            grid=(grid,),
            in_specs=[
                pl.BlockSpec((d_num, tile_b), lambda i: (0, i)),   # x_num^T tile
                pl.BlockSpec((n_cols, tile_b), lambda i: (0, i)),  # x_cat^T tile
                # Weights/biases: constant index_map -> VMEM-resident.  They are
                # only a few KB each, so default double-buffering costs ~nothing.
                pl.BlockSpec(w1t.shape, lambda i: (0, 0)),
                pl.BlockSpec(b1t.shape, lambda i: (0, 0)),
                pl.BlockSpec(w2t.shape, lambda i: (0, 0)),
                pl.BlockSpec(b2t.shape, lambda i: (0, 0)),
            ],
            out_specs=pl.BlockSpec((d_out, tile_b), lambda i: (0, i)),
        ),
        compiler_params=pltpu.CompilerParams(
            dimension_semantics=("parallel",)),
    )(xn_t, xc_t, w1t, b1t, w2t, b2t)
    return out_t.T                                 # [B, D_out]


# ---------------------------------------------------------------------------
# Parameters (PyTorch-equivalent) + one-time kernel-param preparation
# ---------------------------------------------------------------------------
def init_params(key, n_numeric, hidden_size, output_size, n_unique):
    input_size = n_numeric + 2 * len(n_unique)
    ks = jax.random.split(key, 4 + len(n_unique))
    w1 = jax.random.uniform(ks[0], (input_size, hidden_size), jnp.float32, -0.1, 0.1)
    b1 = jax.random.uniform(ks[1], (hidden_size,), jnp.float32, -0.1, 0.1)
    w2 = jax.random.uniform(ks[2], (hidden_size, output_size), jnp.float32, -0.1, 0.1)
    b2 = jax.random.uniform(ks[3], (output_size,), jnp.float32, -0.1, 0.1)
    embeds = [jax.random.normal(ks[4 + i], (n, 2), jnp.float32)   # nn.Embedding(n, 2)
              for i, n in enumerate(n_unique)]
    return {"w1": w1, "b1": b1, "w2": w2, "b2": b2, "embeds": embeds}


def prepare_kernel_params(params, n_numeric, n_unique):
    """One-time prep: fold embeddings into W1 (exact by linearity), stack the
    numeric block of W1 into the same table, store weights feature-major."""
    w1, b1, w2, b2, embeds = (params["w1"], params["b1"], params["w2"],
                              params["b2"], params["embeds"])
    hidden = w1.shape[1]
    d_out = w2.shape[1]
    hp = _round_up(hidden, 8)

    blocks = [w1[:n_numeric]]                      # numeric rows     [D_num, H]
    col_offsets, off = [], 0
    for c, n in enumerate(n_unique):
        w1_cat_c = w1[n_numeric + 2 * c: n_numeric + 2 * (c + 1)]   # [2, H]
        blocks.append(embeds[c] @ w1_cat_c)        # folded rows       [n_c, H]
        col_offsets.append(off)
        off += n
    w_fold = jnp.concatenate(blocks, axis=0)       # [D_num + sum(n), H]
    f_total = w_fold.shape[0]
    f_pad = _round_up(f_total, 8)
    w_fold = jnp.pad(w_fold, ((0, f_pad - f_total), (0, hp - hidden)))

    return {
        "w1t": w_fold.T,                                          # [Hp, F_pad]
        "b1t": jnp.pad(b1, (0, hp - hidden)).reshape(hp, 1),      # [Hp, 1]
        "w2t": jnp.pad(w2, ((0, hp - hidden), (0, 0))).T,         # [D_out, Hp]
        "b2t": b2.reshape(d_out, 1),                              # [D_out, 1]
        "col_offsets": tuple(int(o) for o in col_offsets),        # within mh block
        "n_mh": int(f_pad - n_numeric),
    }


def nn1_reference(x_num, x_cat, params):
    """Plain-JAX reference matching the PyTorch forward exactly."""
    embs = [params["embeds"][i][x_cat[:, i]] for i in range(x_cat.shape[1])]
    x = jnp.concatenate([x_num] + embs, axis=1)
    h = jnp.maximum(x @ params["w1"] + params["b1"], 0.0)
    return jax.nn.sigmoid(h @ params["w2"] + params["b2"])


if __name__ == "__main__":
    n_numeric = 6
    n_unique = [5, 7, 3]            # 3 categorical columns, 2-d embeddings each
    hidden_size = 32
    output_size = 1

    key = jax.random.PRNGKey(0)
    kp, kx, kc, kx2, kc2 = jax.random.split(key, 5)

    params = init_params(kp, n_numeric, hidden_size, output_size, n_unique)
    kparams = prepare_kernel_params(params, n_numeric, n_unique)   # one-time prep

    def make_inputs(kxi, kci, batch):
        x_num = jax.random.normal(kxi, (batch, n_numeric), jnp.float32)
        kcs = jax.random.split(kci, len(n_unique))
        x_cat = jnp.stack(
            [jax.random.randint(kcs[i], (batch,), 0, n) for i, n in enumerate(n_unique)],
            axis=1).astype(jnp.int32)
        return x_num, x_cat

    # Small single-tile batch.
    batch = 8
    x_num, x_cat = make_inputs(kx, kc, batch)
    out = nn1_forward(x_num, x_cat, kparams)
    jax.block_until_ready(out)
    ref = nn1_reference(x_num, x_cat, params)
    assert out.shape == (batch, output_size)
    assert bool(jnp.max(jnp.abs(out - ref)) < 1e-4), "mismatch vs plain-JAX reference"
    assert bool(jnp.all((out >= 0.0) & (out <= 1.0)))

    # Multi-tile batch with a ragged last block (exercises the lane-tiled grid,
    # no wrapper-side batch padding).
    batch2 = 300
    x_num2, x_cat2 = make_inputs(kx2, kc2, batch2)
    out2 = nn1_forward(x_num2, x_cat2, kparams)
    jax.block_until_ready(out2)
    ref2 = nn1_reference(x_num2, x_cat2, params)
    assert out2.shape == (batch2, output_size)
    assert bool(jnp.max(jnp.abs(out2 - ref2)) < 1e-4), "mismatch vs plain-JAX reference"
    assert bool(jnp.all((out2 >= 0.0) & (out2 <= 1.0)))

    print("KERNEL_OK")
</pallas_src>

<mosaic_0001>
module attributes {stable_mosaic.version = 11 : i64} {
  func.func @fused_mlp_kernel(%arg0: i32, %arg1: memref<6x8xf32, #tpu.memory_space<vmem>>, %arg2: memref<3x8xi32, #tpu.memory_space<vmem>>, %arg3: memref<32x24xf32, #tpu.memory_space<vmem>>, %arg4: memref<32x1xf32, #tpu.memory_space<vmem>>, %arg5: memref<1x32xf32, #tpu.memory_space<vmem>>, %arg6: memref<1x1xf32, #tpu.memory_space<vmem>>, %arg7: memref<1x8xf32, #tpu.memory_space<vmem>>) attributes {dimension_semantics = [#tpu.dimension_semantics<parallel>], iteration_bounds = array<i64: 1>, scalar_prefetch = 0 : i64, scratch_operands = 0 : i64, tpu.core_type = #tpu.core_type<tc>, window_params = [{transform_indices = @transform_0, window_bounds = array<i64: 6, 8>}, {transform_indices = @transform_1, window_bounds = array<i64: 3, 8>}, {pipeline_mode = #tpu.pipeline_mode<synchronous>, transform_indices = @transform_2, window_bounds = array<i64: 32, 24>}, {pipeline_mode = #tpu.pipeline_mode<synchronous>, transform_indices = @transform_3, window_bounds = array<i64: 32, 1>}, {pipeline_mode = #tpu.pipeline_mode<synchronous>, transform_indices = @transform_4, window_bounds = array<i64: 1, 32>}, {pipeline_mode = #tpu.pipeline_mode<synchronous>, transform_indices = @transform_5, window_bounds = array<i64: 1, 1>}, {transform_indices = @transform_6, window_bounds = array<i64: 1, 8>}]} {
    %c0 = arith.constant 0 : index
    %c0_0 = arith.constant 0 : index
    %0 = vector.load %arg1[%c0, %c0_0] : memref<6x8xf32, #tpu.memory_space<vmem>>, vector<6x8xf32>
    %c0_1 = arith.constant 0 : index
    %c0_2 = arith.constant 0 : index
    %1 = vector.load %arg2[%c0_1, %c0_2] : memref<3x8xi32, #tpu.memory_space<vmem>>, vector<3x8xi32>
    %2 = tpu.iota {dimensions = array<i32: 0>} : vector<18x8xi32>
    %3 = vector.extract_strided_slice %1 {offsets = [0, 0], sizes = [1, 8], strides = [1, 1]} : vector<3x8xi32> to vector<1x8xi32>
    %c0_i32 = arith.constant 0 : i32
    %4 = vector.broadcast %c0_i32 : i32 to vector<1x8xi32>
    %5 = arith.addi %3, %4 : vector<1x8xi32>
    %6 = vector.broadcast %5 : vector<1x8xi32> to vector<18x8xi32>
    %7 = arith.cmpi eq, %2, %6 : vector<18x8xi32>
    %8 = vector.extract_strided_slice %1 {offsets = [1, 0], sizes = [1, 8], strides = [1, 1]} : vector<3x8xi32> to vector<1x8xi32>
    %c5_i32 = arith.constant 5 : i32
    %9 = vector.broadcast %c5_i32 : i32 to vector<1x8xi32>
    %10 = arith.addi %8, %9 : vector<1x8xi32>
    %11 = vector.broadcast %10 : vector<1x8xi32> to vector<18x8xi32>
    %12 = arith.cmpi eq, %2, %11 : vector<18x8xi32>
    %13 = arith.ori %7, %12 : vector<18x8xi1>
    %14 = vector.extract_strided_slice %1 {offsets = [2, 0], sizes = [1, 8], strides = [1, 1]} : vector<3x8xi32> to vector<1x8xi32>
    %c12_i32 = arith.constant 12 : i32
    %15 = vector.broadcast %c12_i32 : i32 to vector<1x8xi32>
    %16 = arith.addi %14, %15 : vector<1x8xi32>
    %17 = vector.broadcast %16 : vector<1x8xi32> to vector<18x8xi32>
    %18 = arith.cmpi eq, %2, %17 : vector<18x8xi32>
    %19 = arith.ori %13, %18 : vector<18x8xi1>
    %20 = arith.extui %19 : vector<18x8xi1> to vector<18x8xi32>
    %21 = arith.sitofp %20 : vector<18x8xi32> to vector<18x8xf32>
    %22 = tpu.concatenate %0, %21 in 0 : vector<6x8xf32>, vector<18x8xf32> -> vector<24x8xf32>
    %c0_3 = arith.constant 0 : index
    %c0_4 = arith.constant 0 : index
    %23 = vector.load %arg3[%c0_3, %c0_4] : memref<32x24xf32, #tpu.memory_space<vmem>>, vector<32x24xf32>
    %cst = arith.constant dense<0.000000e+00> : vector<32x8xf32>
    %24 = tpu.matmul %23, %22, %cst {dimension_numbers = #tpu.dot_dimension_numbers<[1], [0], [0], [1], [0, 0, 1, 1], [], []>} : vector<32x24xf32>, vector<24x8xf32>, vector<32x8xf32> -> vector<32x8xf32>
    %c0_5 = arith.constant 0 : index
    %c0_6 = arith.constant 0 : index
    %25 = vector.load %arg4[%c0_5, %c0_6] : memref<32x1xf32, #tpu.memory_space<vmem>>, vector<32x1xf32>
    %26 = vector.broadcast %25 : vector<32x1xf32> to vector<32x8xf32>
    %27 = arith.addf %24, %26 : vector<32x8xf32>
    %cst_7 = arith.constant 0.000000e+00 : f32
    %28 = vector.broadcast %cst_7 : f32 to vector<32x8xf32>
    %29 = arith.maximumf %27, %28 : vector<32x8xf32>
    %c0_8 = arith.constant 0 : index
    %c0_9 = arith.constant 0 : index
    %30 = vector.load %arg5[%c0_8, %c0_9] : memref<1x32xf32, #tpu.memory_space<vmem>>, vector<1x32xf32>
    %cst_10 = arith.constant dense<0.000000e+00> : vector<1x8xf32>
    %31 = tpu.matmul %30, %29, %cst_10 {dimension_numbers = #tpu.dot_dimension_numbers<[1], [0], [0], [1], [0, 0, 1, 1], [], []>} : vector<1x32xf32>, vector<32x8xf32>, vector<1x8xf32> -> vector<1x8xf32>
    %c0_11 = arith.constant 0 : index
    %c0_12 = arith.constant 0 : index
    %32 = vector.load %arg6[%c0_11, %c0_12] : memref<1x1xf32, #tpu.memory_space<vmem>>, vector<1x1xf32>
    %33 = vector.broadcast %32 : vector<1x1xf32> to vector<1x8xf32>
    %34 = arith.addf %31, %33 : vector<1x8xf32>
    %35 = arith.negf %34 : vector<1x8xf32>
    %36 = math.exp %35 : vector<1x8xf32>
    %cst_13 = arith.constant 1.000000e+00 : f32
    %37 = vector.broadcast %cst_13 : f32 to vector<1x8xf32>
    %38 = arith.addf %37, %36 : vector<1x8xf32>
    %39 = arith.divf %37, %38 : vector<1x8xf32>
    %c0_14 = arith.constant 0 : index
    %c0_15 = arith.constant 0 : index
    %40 = vector.load %arg7[%c0_14, %c0_15] : memref<1x8xf32, #tpu.memory_space<vmem>>, vector<1x8xf32>
    tpu.vector_store %arg7[%c0_14, %c0_15], %39 {strides = array<i32>} : memref<1x8xf32, #tpu.memory_space<vmem>>, vector<1x8xf32>,
    return
  }
  func.func @transform_0(%arg0: i32) -> (i32, i32) {
    %c0_i32 = arith.constant 0 : i32
    %c0_i32_0 = arith.constant 0 : i32
    return %c0_i32, %arg0 : i32, i32
  }
  func.func @transform_1(%arg0: i32) -> (i32, i32) {
    %c0_i32 = arith.constant 0 : i32
    %c0_i32_0 = arith.constant 0 : i32
    return %c0_i32, %arg0 : i32, i32
  }
  func.func @transform_2(%arg0: i32) -> (i32, i32) {
    %c0_i32 = arith.constant 0 : i32
    %c0_i32_0 = arith.constant 0 : i32
    %c0_i32_1 = arith.constant 0 : i32
    return %c0_i32, %c0_i32_0 : i32, i32
  }
  func.func @transform_3(%arg0: i32) -> (i32, i32) {
    %c0_i32 = arith.constant 0 : i32
    %c0_i32_0 = arith.constant 0 : i32
    %c0_i32_1 = arith.constant 0 : i32
    return %c0_i32, %c0_i32_0 : i32, i32
  }
  func.func @transform_4(%arg0: i32) -> (i32, i32) {
    %c0_i32 = arith.constant 0 : i32
    %c0_i32_0 = arith.constant 0 : i32
    %c0_i32_1 = arith.constant 0 : i32
    return %c0_i32, %c0_i32_0 : i32, i32
  }
  func.func @transform_5(%arg0: i32) -> (i32, i32) {
    %c0_i32 = arith.constant 0 : i32
    %c0_i32_0 = arith.constant 0 : i32
    %c0_i32_1 = arith.constant 0 : i32
    return %c0_i32, %c0_i32_0 : i32, i32
  }
  func.func @transform_6(%arg0: i32) -> (i32, i32) {
    %c0_i32 = arith.constant 0 : i32
    %c0_i32_0 = arith.constant 0 : i32
    return %c0_i32, %arg0 : i32, i32
  }
}

</mosaic_0001>

<bundles_post_ra>
// kernel: tpu_custom_call.1
= control target key start
LH: loop header
LB: loop body
LE: loop exit
PB: predicated region body
PF: predicated region fallthrough
CT: control target
= control target key end

     0   :  { %s512_s0 = inlined_call_operand.vmem [shape: f32[6,8], index: 0, kind: input, shape index: {}]   ;;  %s513_s1 = inlined_call_operand.vmem [shape: s32[3,8], index: 1, kind: input, shape index: {}]   ;;  %s514_s2 = inlined_call_operand.vmem [shape: f32[32,24], index: 2, kind: input, shape index: {}]   ;;  %s515_s3 = inlined_call_operand.vmem [shape: f32[32,1], index: 3, kind: input, shape index: {}]   ;;  %s516_s4 = inlined_call_operand.vmem [shape: f32[1,32], index: 4, kind: input, shape index: {}]   ;;  %s517_s5 = inlined_call_operand.<no memory space> [shape: f32[1,1], index: 5, kind: input, shape index: {}]   ;;  %s518_s6 = inlined_call_operand.hbm [shape: f32[1,8], index: 6, kind: output, shape index: {}]  }
   0x1   :  { %v11_v0 = vstv %s517_s5 }
   0x2   :  { %12 = vst [vmem:[#allocation2] sm:$0x1] %v11_v0 }
   0x3   :  { %v27_v1 = vld [vmem:[%s513_s1] sm:$0x7]  ;;  %v28_v2 = vlaneseq  ;;  %vm108_vm0 = vcmask 195584   ;;  %v406_v8 = vmov 0   ;;  %v86_v9 = vld [vmem:[%s515_s3 + $0x10] sm:$0xff] }
   0x4   :  { %v80_v3 = vld [vmem:[%s514_s2] sm:$0xff]  ;;  %v39_v5 = vadd.s32 5, %v27_v1  ;;  %v50_v6 = vadd.s32 12, %v27_v1  ;;  %376 = vset.pattern.permute.xlu0 %v406_v8  ;;  %377 = vset.pattern.permute.xlu1 %v406_v8 }
   0x5   :  { %v455_v4 = vshrl.u32 %v28_v2, 7  ;;  %344 = vmatprep.mubr.msk.f32.mxu0 %vm108_vm0, %v80_v3  ;;  %v84_v7 = vld [vmem:[%s515_s3] sm:$0xff]  ;;  %100 = vperm.xlu1 %377, %v86_v9  }
   0x6   :  { %90 = vperm.xlu0 %376, %v84_v7  }
   0x7   :  { %v30_v10 = vadd.s32 8, %v455_v4  ;;  %v34_v11 = vsub.s32 0, %v455_v4  ;;  %v42_v12 = vsub.s32 1, %v455_v4  ;;  %v53_v13 = vsub.s32 2, %v455_v4 }
   0x8   :  { %13 = vsyncpa [#allocation4], 0  ;;  %v85_v14 = vld [vmem:[%s515_s3 + $0x8] sm:$0xff]  ;;  %v31_v18 = vadd.s32 16, %v455_v4  ;;  %v87_v19 = vld [vmem:[%s515_s3 + $0x18] sm:$0xff]  ;;  %v407_v22 = vmov 0.0  }
   0x9   :  { %v35_v15 = vrot.slane %v27_v1, %v34_v11  ;;  %v43_v16 = vrot.slane %v39_v5, %v42_v12  ;;  %v54_v17 = vrot.slane %v50_v6, %v53_v13  ;;  %v211_v20 = vld [vmem:[#allocation2] sm:$0x1]  ;;  %105 = vperm.xlu1 %377, %v87_v19   ;;  %vm70_vm14 = vcmask 1045504   ;;  %v81_v33 = vld [vmem:[%s514_s2 + $0x8] sm:$0xff]  ;;  %v82_v34 = vld [vmem:[%s514_s2 + $0x10] sm:$0xff]  ;;  %s410_s16 = smov [#allocation3]  }
   0xa   :  { %95 = vperm.xlu0 %376, %v85_v14   ;;  %v26_v21 = vld [vmem:[%s512_s0] sm:$0x3f]  ;;  %v83_v35 = vld [vmem:[%s514_s2 + $0x18] sm:$0xff]  ;;  %v408_v36 = vmov 0.0|0.0   ;;  %s309_s17 = sshll.u32 %s410_s16, 4  ;;  %s310_s17 = int_to_ptr.vmem [resolvable:$true] %s309_s17 }
   0xb   :  { %vm36_vm1 = vcmp.eq.s32.totalorder %v455_v4, %v35_v15  ;;  %vm37_vm2 = vcmp.eq.s32.totalorder %v30_v10, %v35_v15  ;;  %vm44_vm3 = vcmp.eq.s32.totalorder %v455_v4, %v43_v16  ;;  %vm45_vm4 = vcmp.eq.s32.totalorder %v30_v10, %v43_v16  ;;  %365 = vmatprep.subr.bf16.mxu1 %v408_v36  ;;  %v210_v55 = vld [vmem:[%s516_s4] sm:$0x1]  ;;  %s382_s4 = scalar_lea.vmem %s310_s17, 16  ;;  %s386_s18 = scalar_lea.vmem %s310_s17, 32 }
   0xc   :  { %vm47_vm5 = vmor %vm36_vm1, %vm44_vm3  ;;  %vm55_vm6 = vcmp.eq.s32.totalorder %v455_v4, %v54_v17  ;;  %vm56_vm7 = vcmp.eq.s32.totalorder %v30_v10, %v54_v17  ;;  %vm38_vm9 = vcmp.eq.s32.totalorder %v31_v18, %v35_v15  ;;  %vm46_vm10 = vcmp.eq.s32.totalorder %v31_v18, %v43_v16  ;;  %p383_p0 = scmp.ne.s32.totalorder %s310_s17, %s382_s4  ;;  %p387_p1 = scmp.lt.s32.totalorder %s310_s17, %s310_s17 }
   0xd   :  { %vm48_vm8 = vmor %vm37_vm2, %vm45_vm4  ;;  %vm57_vm12 = vcmp.eq.s32.totalorder %v31_v18, %v54_v17  ;;  %vm409_vm2 = vmmov 0   ;;  %vm301_vm3 = vcmask 57344   ;;  %p388_p2 = scmp.lt.s32.totalorder %s386_s18, %s382_s4 }
   0xe   :  { %vm58_vm11 = vmor %vm47_vm5, %vm55_vm6  ;;  %214 = vperm.xlu0 %376, %v211_v20   ;;  %358 = vmatprep.mubr.msk.f32.mxu1 %vm409_vm2, %v407_v22 }
   0xf   :  { %vm59_vm13 = vmor %vm48_vm8, %vm56_vm7  ;;  %v317_v23 = vsel %vm58_vm11, 1.0, %v407_v22  ;;  %p389_p3 = por %p388_p2, %p387_p1 }
  0x10   :  { %v318_v24 = vsel %vm59_vm13, 1.0, %v407_v22  ;;  %v71_v25 = vrot.slane %v317_v23, 2  ;;  %vm49_vm15 = vmor %vm38_vm9, %vm46_vm10 }
  0x11   :  { %v72_v26 = vrot.slane %v318_v24, 2  ;;  %vm60_vm1 = vmor %vm49_vm15, %vm57_vm12  ;;  %p390_p4 = pnand %p389_p3, %p383_p0 }
  0x12   :  { %v79_v27 = vsel %vm70_vm14, %v26_v21, %v71_v25  ;;  %v319_v28 = vsel %vm60_vm1, 1.0, %v407_v22 }
  0x13   :  { %v73_v29 = vsel %vm70_vm14, %v71_v25, %v72_v26  ;;  %v74_v30 = vrot.slane %v319_v28, 2 }
  0x14   :  { %v361_v31 = vpack.c.bf16 %v73_v29, %v79_v27 }
  0x15   :  { %v75_v32 = vsel %vm70_vm14, %v72_v26, %v74_v30 }
  0x16   :  { %362 = vmatprep.subr.bf16.mxu0 %v361_v31 }
  0x17   :  { %364 = vmatpush3.bf16.msra.mxu0 %v361_v31 }
  0x18   :  { %342 = vmatprep.subr.mxu0 %v75_v32 }
  0x1b   :  { %343 = vmatpush3.msra.mxu0 %v75_v32 }
  0x1c   :  { %345 = vmatmul.mubr.msk.f32.vlgmr.msra.gmra.mrb[0].mxu0 %vm108_vm0, %v81_v33 }
  0x1d   :  { %347 = vmatprep.mubr.msk.f32.mxu0 %vm108_vm0, %v82_v34 }
  0x20   :  { %348 = vmatmul.mubr.msk.f32.gmra.mrb[2].mxu0 %vm108_vm0, %v83_v35  ;;  %vm221_vm0 = vcmask 261120  }
  0x84   :  { %v101_v38 = vpop.permute.xlu1 %100 }
  0x85   :  { %v91_v37 = vpop.permute.xlu0 %90 }
  0x88   :  { %v106_v45 = vpop.permute.xlu1 %105 }
  0x89   :  { %v96_v39 = vpop.permute.xlu0 %95 }
  0x8d   :  { %v215_v56 = vpop.permute.xlu0 %214 }
  0x8e   :  { %v220_v57 = vrot.slane %v215_v56, %v34_v11 }
  0xef   :  { %v346_v40 = vpop.f32.mrb[0].mxu0 }
  0xf0   :  { %v193_v41 = vadd.f32 %v346_v40, %v96_v39  ;;  %v187_v42 = vpop.f32.mrb[1].mxu0 }
  0xf1   :  { %v188_v43 = vadd.f32 %v187_v42, %v91_v37 }
  0xf2   :  { %v207_v44 = vmax.f32 %v193_v41, 0.0 }
  0xf3   :  { %v206_v46 = vmax.f32 %v188_v43, 0.0  ;;  %v349_v47 = vpop.f32.mrb[2].mxu0 }
  0xf4   :  { %v203_v48 = vadd.f32 %v349_v47, %v106_v45  ;;  %v197_v49 = vpop.f32.mrb[3].mxu0 }
  0xf5   :  { %v198_v50 = vadd.f32 %v197_v49, %v101_v38  ;;  %v366_v51 = vpack.c.bf16 %v207_v44, %v206_v46 }
  0xf6   :  { %v209_v52 = vmax.f32 %v203_v48, 0.0 }
  0xf7   :  { %v208_v53 = vmax.f32 %v198_v50, 0.0  ;;  %367 = vmatpush3.bf16.msra.mxu1 %v366_v51 }
  0xf8   :  { %368 = vmatprep.subr.bf16.mxu1 %v408_v36 }
  0xf9   :  { %v369_v54 = vpack.c.bf16 %v209_v52, %v208_v53 }
  0xfb   :  { %370 = vmatpush3.bf16.msra.mxu1 %v369_v54 }
  0xfe   :  { %359 = vmatmul.mubr.msk.f32.vlgmr.msra.gmra.mrb[0].mxu1 %vm221_vm0, %v210_v55 }
 0x1d1   :  { %v291_v58 = vpop.f32.mrb[0].mxu1 }
 0x1d2   :  { %v292_v59 = vadd.f32 %v291_v58, %v220_v57  ;;  %v360_v60 = vpop.f32.mrb[1].mxu1 }
 0x1d4   :  { %v325_v61 = vmul.f32 -1.442695, %v292_v59 }
 0x1d6   :  { %378 = vpow2.f32 %v325_v61 }
 0x1e0   :  { %v379_v62 = vpop.eup %378 }
 0x1e1   :  { %v298_v63 = vadd.f32 1.0, %v379_v62 }
 0x1e3   :  { %380 = vrcp.f32 %v298_v63 }
 0x1ed   :  { %v381_v0 = vpop.eup %380 }
 0x1ee   :  { %302 = vst.msk [vmem:[#allocation3] sm:$0x1] %vm301_vm3, %v381_v0 }
 0x1ef   :  { %393 = shalt.err (!%p390_p4)
}
 0x1f0   :  { %s394_s21 = scalar_lea.hbm %s518_s6, 16 }
 0x1f1   :  { %p395_p5 = scmp.ne.s32.totalorder %s518_s6, %s394_s21  ;;  %p398_p6 = scmp.lt.u32.totalorder %s394_s21, %s518_s6 }
 0x1f3   :  { %p400_p7 = pnand %p398_p6, %p395_p5 }
 0x1f5   :  { %403 = shalt.err (!%p400_p7)
}
 0x1f6   :  { %312 = dma.vmem_to_hbm [thread:$0]  %s310_s17, 16, %s518_s6, [#allocation4]  }
 0x1f7   :  { %404 = dma.done.wait [#allocation4], 16  }
 0x1f8   :  { %405 = vsyncadd [#allocation4], 4294967280 }
 0x1f9   :  { %316 = vsyncpa [#allocation4], 1 }

</bundles_post_ra>
